<compile_context>
chip_gen: v5e
topology: v5e:2x2
jax: 0.10.0
libtpu: 0.0.40
codegen_flags: <defaults>
</compile_context>

<pallas_src>
import functools

import jax
import jax.numpy as jnp
from jax.experimental import pallas as pl
from jax.experimental.pallas import tpu as pltpu

# hyperparameters from CAEModel(...) construction inside Learner.__init__
HIDDEN = 20
L1_GRAPH_PENALTY = 0.05
ALPHA = 20.0
RHO = 0.0002

_VMEM_LIMIT_BYTES = 32 * 1024 * 1024   # within default scoped VMEM on v5e/v6e/v7x

# lane layout of the packed per-block scalar-gradient vector (one lane-dense store)
_LANE_W1, _LANE_B1, _LANE_W2, _LANE_B2 = 0, 32, 64, 96
assert HIDDEN <= 32

_SMEM_SPEC = pl.BlockSpec(memory_space=pltpu.MemorySpace.SMEM)
_HIGHEST = jax.lax.Precision.HIGHEST


def _round_up(x, m):
    return ((x + m - 1) // m) * m


def _choose_tile(n, d):
    """Samples sit on the lane axis; keep each (d, tile) live array <= ~8 vregs so the
    HIDDEN-step unrolled encoder (x + g + temp live) stays well inside the 64-vreg file."""
    vregs_per_lane_group = -(-d // 8)                      # ceil(d / 8)
    max_lanes = max(128, ((8 * 128) // vregs_per_lane_group) // 128 * 128)
    return min(max_lanes, _round_up(n, 128))


def _pad_transpose(x, tile_n):
    """(n, d) -> lane-dense (d, n_pad). Done ONCE outside the training loop."""
    n, _ = x.shape
    n_pad = _round_up(n, tile_n)
    return jnp.pad(x.T, ((0, 0), (0, n_pad - n)))


# ---------------------------------------------------------------------------
# Shared math (used inside the kernels and by the plain-JAX reference)
# ---------------------------------------------------------------------------
def _encode_decode(x, w1, b1, w2):
    """G = sum_h relu(x*w1[0,h] + b1[0,h]) * w2[0,h]  (elementwise, layout-agnostic).

    HIDDEN-step scalar-splat loop: no rank-3 intermediate, no relayouts.
    w1/b1/w2 may be jnp arrays or Pallas SMEM refs (static scalar indexing)."""
    g = jnp.zeros(x.shape, jnp.float32)
    for hh in range(HIDDEN):
        g = g + jnp.maximum(x * w1[0, hh] + b1[0, hh], 0.0) * w2[0, hh]
    return g


def _acyclicity(B, d):
    """h(B) = tr((I + B.B/d)^d) - d via binary exponentiation (tiny d x d, plain XLA)."""
    row = jax.lax.broadcasted_iota(jnp.int32, (d, d), 0)
    col = jax.lax.broadcasted_iota(jnp.int32, (d, d), 1)
    eye = (row == col).astype(jnp.float32)
    m = eye + (B * B) * (1.0 / d)
    result, base, e = None, m, d
    while e > 0:
        if e & 1:
            result = base if result is None else jnp.dot(
                result, base, preferred_element_type=jnp.float32, precision=_HIGHEST)
        e >>= 1
        if e:
            base = jnp.dot(base, base, preferred_element_type=jnp.float32,
                           precision=_HIGHEST)
    return jnp.sum(result * eye) - d


def _combine_loss(params, sse, n):
    """Scalar combine (MSE + L1 + acyclicity penalties). Tiny; shared by all paths so
    forward values and gradients can never desynchronize on the regularizer terms."""
    d = params["B"].shape[0]
    h = _acyclicity(params["B"], d)
    l1 = L1_GRAPH_PENALTY * jnp.sum(jnp.abs(params["B"]))
    loss = (0.5 / n) * sse + l1 + ALPHA * h + 0.5 * RHO * h * h
    return loss, h


def _fold_lane_groups(a):
    """(r, T) -> (r, 128) by adding 128-wide lane groups (pure VPU adds, no relayout)."""
    _, t = a.shape
    acc = a[:, :128]
    for g in range(1, t // 128):
        acc = acc + a[:, g * 128:(g + 1) * 128]
    return acc


# ---------------------------------------------------------------------------
# Pallas forward kernel (lane-dense transposed layout, optional xhat output)
# ---------------------------------------------------------------------------
def _cae_fwd_kernel(xt_ref, w1_ref, b1_ref, w2_ref, b2_ref, bt_ref,
                    ssep_ref, *xhat_refs, n_valid, tile_n, n_blocks):
    i = pl.program_id(0)
    xt = xt_ref[...]                                            # (d, TILE_N), lane-dense
    gt = _encode_decode(xt, w1_ref, b1_ref, w2_ref)             # (d, TILE_N)
    # graph mixing in transposed layout: Xhat^T = B^T @ G^T + b2
    # TODO(synk): for d <= ~8 do this mixing on the VPU (skip MXU FIFO latency).
    xhat_t = jnp.dot(bt_ref[...], gt, preferred_element_type=jnp.float32) + b2_ref[0, 0]
    if xhat_refs:
        xhat_refs[0][...] = xhat_t                              # lane-dense store
    diff = xhat_t - xt

    def write_ssep(d2):
        # lane-group fold = VPU adds; one tiny cross-sublane reduce per block
        ssep_ref[...] = jnp.sum(_fold_lane_groups(d2), axis=0,
                                keepdims=True).reshape(1, 1, 128)

    if n_valid % tile_n == 0:
        # static: no padded samples anywhere -> no masking ops at all
        write_ssep(diff * diff)
    else:
        last = n_blocks - 1

        @pl.when(i != last)
        def _():
            write_ssep(diff * diff)

        @pl.when(i == last)
        def _():
            col = last * tile_n + jax.lax.broadcasted_iota(jnp.int32, diff.shape, 1)
            masked = jnp.where(col < n_valid, diff, 0.0)
            write_ssep(masked * masked)


# ---------------------------------------------------------------------------
# Pallas backward kernel: recompute-per-tile + dSSE/d{w1,b1,w2,b2,B}
# ---------------------------------------------------------------------------
def _cae_bwd_kernel(xt_ref, w1_ref, b1_ref, w2_ref, b2_ref, bt_ref, b_ref,
                    dvec_ref, dB_ref, *, n_valid, tile_n):
    i = pl.program_id(0)
    xt = xt_ref[...]                                            # (d, TILE_N)
    # recompute the tile forward (cheaper than writing G / Xhat residuals to HBM)
    gt = _encode_decode(xt, w1_ref, b1_ref, w2_ref)
    xhat_t = jnp.dot(bt_ref[...], gt, preferred_element_type=jnp.float32) + b2_ref[0, 0]
    rt = 2.0 * (xhat_t - xt)                                    # dSSE/dXhat^T
    if n_valid % tile_n != 0:
        # static skip when there is no padding; otherwise mask everywhere (cost is
        # ~1-2% of the ~200 VPU ops/element backward, not worth a pl.when split)
        col = i * tile_n + jax.lax.broadcasted_iota(jnp.int32, rt.shape, 1)
        rt = jnp.where(col < n_valid, rt, 0.0)

    # dSSE/dB[k, l] = sum_s G^T[k, s] * R^T[l, s]
    dB_ref[...] = jnp.dot(gt, rt.T,
                          preferred_element_type=jnp.float32).reshape(dB_ref.shape)
    # dSSE/dG^T = B @ R^T
    dg = jnp.dot(b_ref[...], rt, preferred_element_type=jnp.float32)

    # encoder-parameter grads packed into ONE lane-dense (1, 128) vector per block
    lane = jax.lax.broadcasted_iota(jnp.int32, (1, 128), 1)
    acc = jnp.where(lane == _LANE_B2, jnp.sum(rt, keepdims=True), 0.0)
    for hh in range(HIDDEN):
        w1h, b1h, w2h = w1_ref[0, hh], b1_ref[0, hh], w2_ref[0, hh]
        z = xt * w1h + b1h
        a = jnp.maximum(z, 0.0)
        t = dg * jnp.where(z > 0.0, w2h, 0.0)
        acc = acc + jnp.where(lane == _LANE_W2 + hh, jnp.sum(dg * a, keepdims=True), 0.0)
        acc = acc + jnp.where(lane == _LANE_B1 + hh, jnp.sum(t, keepdims=True), 0.0)
        acc = acc + jnp.where(lane == _LANE_W1 + hh, jnp.sum(t * xt, keepdims=True), 0.0)
    dvec_ref[...] = acc.reshape(1, 1, 128)


# ---------------------------------------------------------------------------
# pallas_call wrappers
# ---------------------------------------------------------------------------
def _pallas_cae_fwd(params, xt_pad, n_valid, tile_n, with_xhat):
    d, n_pad = xt_pad.shape
    n_blocks = n_pad // tile_n
    kernel = functools.partial(_cae_fwd_kernel, n_valid=n_valid, tile_n=tile_n,
                               n_blocks=n_blocks)
    out_specs = [pl.BlockSpec((1, 1, 128), lambda i: (i, 0, 0))]
    out_shape = [jax.ShapeDtypeStruct((n_blocks, 1, 128), jnp.float32)]
    if with_xhat:
        out_specs.append(pl.BlockSpec((d, tile_n), lambda i: (0, i)))
        out_shape.append(jax.ShapeDtypeStruct((d, n_pad), jnp.float32))

    outs = pl.pallas_call(
        kernel,
        grid=(n_blocks,),
        in_specs=[
            pl.BlockSpec((d, tile_n), lambda i: (0, i)),   # X^T: lane-dense sample tiles
            _SMEM_SPEC, _SMEM_SPEC, _SMEM_SPEC, _SMEM_SPEC,  # w1, b1, w2, b2 scalars
            # TODO(synk): pipeline_mode=pl.Buffered(1) for B^T at large d (v7x VMEM).
            pl.BlockSpec((d, d), lambda i: (0, 0)),        # B^T resident
        ],
        out_specs=tuple(out_specs),
        out_shape=tuple(out_shape),
        compiler_params=pltpu.CompilerParams(
            dimension_semantics=("parallel",),   # per-block outputs -> megacore safe
            vmem_limit_bytes=_VMEM_LIMIT_BYTES,
        ),
    )(xt_pad, params["w1"], params["b1"], params["w2"], params["b2"], params["B"].T)

    sse = jnp.sum(outs[0])
    xhat_t = outs[1] if with_xhat else None
    return sse, xhat_t


def _pallas_cae_bwd(params, xt_pad, n_valid, tile_n):
    d, n_pad = xt_pad.shape
    n_blocks = n_pad // tile_n
    kernel = functools.partial(_cae_bwd_kernel, n_valid=n_valid, tile_n=tile_n)
    dvec, dBp = pl.pallas_call(
        kernel,
        grid=(n_blocks,),
        in_specs=[
            pl.BlockSpec((d, tile_n), lambda i: (0, i)),
            _SMEM_SPEC, _SMEM_SPEC, _SMEM_SPEC, _SMEM_SPEC,
            pl.BlockSpec((d, d), lambda i: (0, 0)),        # B^T resident
            pl.BlockSpec((d, d), lambda i: (0, 0)),        # B resident
        ],
        out_specs=(pl.BlockSpec((1, 1, 128), lambda i: (i, 0, 0)),
                   pl.BlockSpec((1, d, d), lambda i: (i, 0, 0))),
        out_shape=(jax.ShapeDtypeStruct((n_blocks, 1, 128), jnp.float32),
                   jax.ShapeDtypeStruct((n_blocks, d, d), jnp.float32)),
        compiler_params=pltpu.CompilerParams(
            dimension_semantics=("parallel",),
            vmem_limit_bytes=_VMEM_LIMIT_BYTES,
        ),
    )(xt_pad, params["w1"], params["b1"], params["w2"], params["b2"],
      params["B"].T, params["B"])

    vec = jnp.sum(dvec, axis=(0, 1))                       # (128,)
    return {
        "w1": vec[_LANE_W1:_LANE_W1 + HIDDEN].reshape(1, HIDDEN),
        "b1": vec[_LANE_B1:_LANE_B1 + HIDDEN].reshape(1, HIDDEN),
        "w2": vec[_LANE_W2:_LANE_W2 + HIDDEN].reshape(1, HIDDEN),
        "b2": vec[_LANE_B2:_LANE_B2 + 1].reshape(1, 1),
        "B": jnp.sum(dBp, axis=0),
    }


# ---------------------------------------------------------------------------
# Differentiable SSE op: Pallas forward + fused Pallas backward (no XLA re-forward)
# ---------------------------------------------------------------------------
@functools.partial(jax.custom_vjp, nondiff_argnums=(0,))
def _sse_op(cfg, params, xt_pad):
    sse, _ = _pallas_cae_fwd(params, xt_pad, cfg[0], cfg[1], with_xhat=False)
    return sse


def _sse_op_fwd(cfg, params, xt_pad):
    sse, _ = _pallas_cae_fwd(params, xt_pad, cfg[0], cfg[1], with_xhat=False)
    return sse, (params, xt_pad)


def _sse_op_bwd(cfg, res, gbar):
    params, xt_pad = res
    raw = _pallas_cae_bwd(params, xt_pad, cfg[0], cfg[1])
    dparams = jax.tree_util.tree_map(lambda g_: gbar * g_, raw)
    # TODO(synk): data-input gradients are not propagated (torch data has
    # requires_grad=False, so the module never needs them).
    return dparams, jnp.zeros_like(xt_pad)


_sse_op.defvjp(_sse_op_fwd, _sse_op_bwd)


def cae_loss(params, xt_pad, n_valid, tile_n):
    """CAEModel loss only (hot value_and_grad path, no xhat writeback)."""
    sse = _sse_op((n_valid, tile_n), params, xt_pad)
    loss, _ = _combine_loss(params, sse, n_valid)
    return loss


def cae_forward_full(params, xt_pad, n_valid, tile_n):
    """CAEModel.forward -> (loss, reconstruction, h)."""
    sse, xhat_t = _pallas_cae_fwd(params, xt_pad, n_valid, tile_n, with_xhat=True)
    loss, h = _combine_loss(params, sse, n_valid)
    return loss, xhat_t[:, :n_valid].T, h


# ---------------------------------------------------------------------------
# Plain-JAX reference (same shared helpers) — used only by the self-check
# ---------------------------------------------------------------------------
def cae_forward_ref(params, x):
    n, _ = x.shape
    G = _encode_decode(x, params["w1"], params["b1"], params["w2"])
    xhat = jnp.dot(G, params["B"], preferred_element_type=jnp.float32,
                   precision=_HIGHEST) + params["b2"][0, 0]
    diff = x - xhat
    sse = jnp.sum(diff * diff)
    loss, h = _combine_loss(params, sse, n)
    return loss, xhat, h


# ---------------------------------------------------------------------------
# Adam (matches torch.optim.Adam defaults: betas=(0.9, 0.999), eps=1e-8)
# ---------------------------------------------------------------------------
def adam_init(params):
    return {
        "m": jax.tree_util.tree_map(jnp.zeros_like, params),
        "v": jax.tree_util.tree_map(jnp.zeros_like, params),
        "t": jnp.zeros((), jnp.int32),
    }


def adam_step(params, grads, state, lr, b1=0.9, b2=0.999, eps=1e-8):
    t = state["t"] + 1
    tf = t.astype(jnp.float32)
    m = jax.tree_util.tree_map(lambda m_, g: b1 * m_ + (1 - b1) * g, state["m"], grads)
    v = jax.tree_util.tree_map(lambda v_, g: b2 * v_ + (1 - b2) * g * g, state["v"], grads)
    bc1 = 1.0 - jnp.power(jnp.float32(b1), tf)
    bc2 = 1.0 - jnp.power(jnp.float32(b2), tf)
    new_params = jax.tree_util.tree_map(
        lambda p, m_, v_: p - lr * (m_ / bc1) / (jnp.sqrt(v_ / bc2) + eps),
        params, m, v)
    return new_params, {"m": m, "v": v, "t": t}


# ---------------------------------------------------------------------------
# Learner / MetaLearner forward (jitted training-loop glue)
# ---------------------------------------------------------------------------
def learner_forward(params1, opt2_state, xt_pad, n, tile_n, *, meta_step=1,
                    inner_lr=0.002):
    """Learner.forward: copy params (update_pi), meta_step Adam updates on the copy,
    then (test_loss, grads_pi) from the updated copy — Pallas forward + Pallas VJP."""
    loss_and_grad = jax.value_and_grad(lambda p: cae_loss(p, xt_pad, n, tile_n))
    params2 = params1                                     # update_pi(): functional copy
    for _ in range(meta_step):
        _, g = loss_and_grad(params2)
        params2, opt2_state = adam_step(params2, g, opt2_state, lr=inner_lr)
    test_loss, grads_pi = loss_and_grad(params2)          # autograd.grad equivalent
    return test_loss, grads_pi, opt2_state


@functools.partial(jax.jit, static_argnames=("epoch",))
def meta_learner_forward(params1, data, epoch, beta):
    """MetaLearner.forward(data, epoch): epoch outer (Reptile-style) updates.
    # TODO(synk): torch keeps the Adam moment buffers on the module objects across
    # calls; here they persist only for the duration of this call."""
    n, d = data.shape
    tile_n = _choose_tile(n, d)
    xt_pad = _pad_transpose(data, tile_n)    # pad/transpose ONCE, outside the loop
    opt1_state = adam_init(params1)          # MetaLearner.optimizer (lr=beta)
    opt2_state = adam_init(params1)          # Learner.optim (lr=0.002)
    last0 = (jnp.zeros((), jnp.float32), jnp.zeros((), jnp.float32),
             jnp.zeros((n, d), jnp.float32), jnp.zeros((), jnp.float32))

    def body(_, carry):
        p1, o1, o2, _last = carry
        test_loss, grads_pi, o2 = learner_forward(p1, o2, xt_pad, n, tile_n)
        sum_grads_pi = grads_pi                                  # single Learner per epoch
        dummy_loss, pred, h1 = cae_forward_full(p1, xt_pad, n, tile_n)  # model_1_forward
        # write_grads: hooks replace model_1 grads with sum_grads_pi, then Adam step
        p1, o1 = adam_step(p1, sum_grads_pi, o1, lr=beta)
        return (p1, o1, o2, (test_loss, dummy_loss, pred, h1))

    params1, _o1, _o2, last = jax.lax.fori_loop(
        0, epoch, body, (params1, opt1_state, opt2_state, last0))
    return params1, last


# ---------------------------------------------------------------------------
if __name__ == "__main__":
    n, d = 200, 4          # n samples, d graph variables
    beta, epoch = 0.01, 2

    key = jax.random.PRNGKey(0)
    k_data, k_w1, k_w2, k_B, k_b1 = jax.random.split(key, 5)
    data = jax.random.normal(k_data, (n, d), dtype=jnp.float32)

    # deterministic parameter init (B_init=None -> zeros adjacency)
    params = {
        "w1": 0.1 * jax.random.normal(k_w1, (1, HIDDEN), dtype=jnp.float32),
        "b1": jnp.zeros((1, HIDDEN), dtype=jnp.float32),
        "w2": 0.1 * jax.random.normal(k_w2, (1, HIDDEN), dtype=jnp.float32),
        "b2": jnp.zeros((1, 1), dtype=jnp.float32),
        "B": jnp.zeros((d, d), dtype=jnp.float32),
    }

    # ---- self-check: VALUE and GRAD vs the plain-JAX reference, exercising a
    #      multi-block grid (tile 128 -> 2 blocks) plus the padded-tail mask path.
    chk_params = dict(
        params,
        B=0.1 * jax.random.normal(k_B, (d, d), dtype=jnp.float32),
        b1=0.05 * jax.random.normal(k_b1, (1, HIDDEN), dtype=jnp.float32))
    tile_chk = 128
    xt_chk = _pad_transpose(data, tile_chk)

    k_loss, k_xhat, k_h = cae_forward_full(chk_params, xt_chk, n, tile_chk)
    r_loss, r_xhat, r_h = cae_forward_ref(chk_params, data)
    assert jnp.allclose(k_loss, r_loss, rtol=1e-5, atol=1e-5), (k_loss, r_loss)
    assert jnp.allclose(k_xhat, r_xhat, rtol=1e-5, atol=1e-5)
    assert jnp.allclose(k_h, r_h, rtol=1e-5, atol=1e-5)

    k_grads = jax.grad(lambda p: cae_loss(p, xt_chk, n, tile_chk))(chk_params)
    r_grads = jax.grad(lambda p: cae_forward_ref(p, data)[0])(chk_params)
    for name in params:
        assert jnp.allclose(k_grads[name], r_grads[name],
                            rtol=1e-4, atol=1e-4), name

    # ---- full jitted meta-training forward: the Pallas kernels are the hot path for
    #      both the reported losses and (via custom_vjp) every gradient step.
    new_params, (test_loss, dummy_loss, pred, h) = meta_learner_forward(
        params, data, epoch, beta)
    jax.block_until_ready((new_params, test_loss, dummy_loss, pred, h))
    print("KERNEL_OK")
</pallas_src>

<mosaic_0001>
module attributes {stable_mosaic.version = 11 : i64} {
  func.func @_cae_fwd_kernel(%arg0: i32, %arg1: memref<4x128xf32, #tpu.memory_space<vmem>>, %arg2: memref<1x20xf32, #tpu.memory_space<smem>>, %arg3: memref<1x20xf32, #tpu.memory_space<smem>>, %arg4: memref<1x20xf32, #tpu.memory_space<smem>>, %arg5: memref<1x1xf32, #tpu.memory_space<smem>>, %arg6: memref<4x4xf32, #tpu.memory_space<vmem>>, %arg7: memref<1x1x128xf32, #tpu.memory_space<vmem>>, %arg8: memref<4x128xf32, #tpu.memory_space<vmem>>) attributes {dimension_semantics = [#tpu.dimension_semantics<parallel>], iteration_bounds = array<i64: 2>, scalar_prefetch = 0 : i64, scratch_operands = 0 : i64, tpu.core_type = #tpu.core_type<tc>, window_params = [{transform_indices = @transform_0, window_bounds = array<i64: 4, 128>}, {transform_indices = @transform_1, window_bounds = array<i64: 1, 20>}, {transform_indices = @transform_2, window_bounds = array<i64: 1, 20>}, {transform_indices = @transform_3, window_bounds = array<i64: 1, 20>}, {transform_indices = @transform_4, window_bounds = array<i64: 1, 1>}, {pipeline_mode = #tpu.pipeline_mode<synchronous>, transform_indices = @transform_5, window_bounds = array<i64: 4, 4>}, {transform_indices = @transform_6, window_bounds = array<i64: 1, 1, 128>}, {transform_indices = @transform_7, window_bounds = array<i64: 4, 128>}]} {
    %c0 = arith.constant 0 : index
    %c0_0 = arith.constant 0 : index
    %0 = vector.load %arg1[%c0, %c0_0] : memref<4x128xf32, #tpu.memory_space<vmem>>, vector<4x128xf32>
    %cst = arith.constant 0.000000e+00 : f32
    %1 = vector.broadcast %cst : f32 to vector<4x128xf32>
    %c0_1 = arith.constant 0 : index
    %c0_2 = arith.constant 0 : index
    %2 = memref.load %arg2[%c0_1, %c0_2] : memref<1x20xf32, #tpu.memory_space<smem>>
    %3 = vector.broadcast %2 : f32 to vector<4x128xf32>
    %4 = arith.mulf %0, %3 : vector<4x128xf32>
    %c0_3 = arith.constant 0 : index
    %c0_4 = arith.constant 0 : index
    %5 = memref.load %arg3[%c0_3, %c0_4] : memref<1x20xf32, #tpu.memory_space<smem>>
    %6 = vector.broadcast %5 : f32 to vector<4x128xf32>
    %7 = arith.addf %4, %6 : vector<4x128xf32>
    %cst_5 = arith.constant 0.000000e+00 : f32
    %8 = vector.broadcast %cst_5 : f32 to vector<4x128xf32>
    %9 = arith.maximumf %7, %8 : vector<4x128xf32>
    %c0_6 = arith.constant 0 : index
    %c0_7 = arith.constant 0 : index
    %10 = memref.load %arg4[%c0_6, %c0_7] : memref<1x20xf32, #tpu.memory_space<smem>>
    %11 = vector.broadcast %10 : f32 to vector<4x128xf32>
    %12 = arith.mulf %9, %11 : vector<4x128xf32>
    %13 = arith.addf %1, %12 : vector<4x128xf32>
    %c0_8 = arith.constant 0 : index
    %c1 = arith.constant 1 : index
    %14 = memref.load %arg2[%c0_8, %c1] : memref<1x20xf32, #tpu.memory_space<smem>>
    %15 = vector.broadcast %14 : f32 to vector<4x128xf32>
    %16 = arith.mulf %0, %15 : vector<4x128xf32>
    %c0_9 = arith.constant 0 : index
    %c1_10 = arith.constant 1 : index
    %17 = memref.load %arg3[%c0_9, %c1_10] : memref<1x20xf32, #tpu.memory_space<smem>>
    %18 = vector.broadcast %17 : f32 to vector<4x128xf32>
    %19 = arith.addf %16, %18 : vector<4x128xf32>
    %cst_11 = arith.constant 0.000000e+00 : f32
    %20 = vector.broadcast %cst_11 : f32 to vector<4x128xf32>
    %21 = arith.maximumf %19, %20 : vector<4x128xf32>
    %c0_12 = arith.constant 0 : index
    %c1_13 = arith.constant 1 : index
    %22 = memref.load %arg4[%c0_12, %c1_13] : memref<1x20xf32, #tpu.memory_space<smem>>
    %23 = vector.broadcast %22 : f32 to vector<4x128xf32>
    %24 = arith.mulf %21, %23 : vector<4x128xf32>
    %25 = arith.addf %13, %24 : vector<4x128xf32>
    %c0_14 = arith.constant 0 : index
    %c2 = arith.constant 2 : index
    %26 = memref.load %arg2[%c0_14, %c2] : memref<1x20xf32, #tpu.memory_space<smem>>
    %27 = vector.broadcast %26 : f32 to vector<4x128xf32>
    %28 = arith.mulf %0, %27 : vector<4x128xf32>
    %c0_15 = arith.constant 0 : index
    %c2_16 = arith.constant 2 : index
    %29 = memref.load %arg3[%c0_15, %c2_16] : memref<1x20xf32, #tpu.memory_space<smem>>
    %30 = vector.broadcast %29 : f32 to vector<4x128xf32>
    %31 = arith.addf %28, %30 : vector<4x128xf32>
    %cst_17 = arith.constant 0.000000e+00 : f32
    %32 = vector.broadcast %cst_17 : f32 to vector<4x128xf32>
    %33 = arith.maximumf %31, %32 : vector<4x128xf32>
    %c0_18 = arith.constant 0 : index
    %c2_19 = arith.constant 2 : index
    %34 = memref.load %arg4[%c0_18, %c2_19] : memref<1x20xf32, #tpu.memory_space<smem>>
    %35 = vector.broadcast %34 : f32 to vector<4x128xf32>
    %36 = arith.mulf %33, %35 : vector<4x128xf32>
    %37 = arith.addf %25, %36 : vector<4x128xf32>
    %c0_20 = arith.constant 0 : index
    %c3 = arith.constant 3 : index
    %38 = memref.load %arg2[%c0_20, %c3] : memref<1x20xf32, #tpu.memory_space<smem>>
    %39 = vector.broadcast %38 : f32 to vector<4x128xf32>
    %40 = arith.mulf %0, %39 : vector<4x128xf32>
    %c0_21 = arith.constant 0 : index
    %c3_22 = arith.constant 3 : index
    %41 = memref.load %arg3[%c0_21, %c3_22] : memref<1x20xf32, #tpu.memory_space<smem>>
    %42 = vector.broadcast %41 : f32 to vector<4x128xf32>
    %43 = arith.addf %40, %42 : vector<4x128xf32>
    %cst_23 = arith.constant 0.000000e+00 : f32
    %44 = vector.broadcast %cst_23 : f32 to vector<4x128xf32>
    %45 = arith.maximumf %43, %44 : vector<4x128xf32>
    %c0_24 = arith.constant 0 : index
    %c3_25 = arith.constant 3 : index
    %46 = memref.load %arg4[%c0_24, %c3_25] : memref<1x20xf32, #tpu.memory_space<smem>>
    %47 = vector.broadcast %46 : f32 to vector<4x128xf32>
    %48 = arith.mulf %45, %47 : vector<4x128xf32>
    %49 = arith.addf %37, %48 : vector<4x128xf32>
    %c0_26 = arith.constant 0 : index
    %c4 = arith.constant 4 : index
    %50 = memref.load %arg2[%c0_26, %c4] : memref<1x20xf32, #tpu.memory_space<smem>>
    %51 = vector.broadcast %50 : f32 to vector<4x128xf32>
    %52 = arith.mulf %0, %51 : vector<4x128xf32>
    %c0_27 = arith.constant 0 : index
    %c4_28 = arith.constant 4 : index
    %53 = memref.load %arg3[%c0_27, %c4_28] : memref<1x20xf32, #tpu.memory_space<smem>>
    %54 = vector.broadcast %53 : f32 to vector<4x128xf32>
    %55 = arith.addf %52, %54 : vector<4x128xf32>
    %cst_29 = arith.constant 0.000000e+00 : f32
    %56 = vector.broadcast %cst_29 : f32 to vector<4x128xf32>
    %57 = arith.maximumf %55, %56 : vector<4x128xf32>
    %c0_30 = arith.constant 0 : index
    %c4_31 = arith.constant 4 : index
    %58 = memref.load %arg4[%c0_30, %c4_31] : memref<1x20xf32, #tpu.memory_space<smem>>
    %59 = vector.broadcast %58 : f32 to vector<4x128xf32>
    %60 = arith.mulf %57, %59 : vector<4x128xf32>
    %61 = arith.addf %49, %60 : vector<4x128xf32>
    %c0_32 = arith.constant 0 : index
    %c5 = arith.constant 5 : index
    %62 = memref.load %arg2[%c0_32, %c5] : memref<1x20xf32, #tpu.memory_space<smem>>
    %63 = vector.broadcast %62 : f32 to vector<4x128xf32>
    %64 = arith.mulf %0, %63 : vector<4x128xf32>
    %c0_33 = arith.constant 0 : index
    %c5_34 = arith.constant 5 : index
    %65 = memref.load %arg3[%c0_33, %c5_34] : memref<1x20xf32, #tpu.memory_space<smem>>
    %66 = vector.broadcast %65 : f32 to vector<4x128xf32>
    %67 = arith.addf %64, %66 : vector<4x128xf32>
    %cst_35 = arith.constant 0.000000e+00 : f32
    %68 = vector.broadcast %cst_35 : f32 to vector<4x128xf32>
    %69 = arith.maximumf %67, %68 : vector<4x128xf32>
    %c0_36 = arith.constant 0 : index
    %c5_37 = arith.constant 5 : index
    %70 = memref.load %arg4[%c0_36, %c5_37] : memref<1x20xf32, #tpu.memory_space<smem>>
    %71 = vector.broadcast %70 : f32 to vector<4x128xf32>
    %72 = arith.mulf %69, %71 : vector<4x128xf32>
    %73 = arith.addf %61, %72 : vector<4x128xf32>
    %c0_38 = arith.constant 0 : index
    %c6 = arith.constant 6 : index
    %74 = memref.load %arg2[%c0_38, %c6] : memref<1x20xf32, #tpu.memory_space<smem>>
    %75 = vector.broadcast %74 : f32 to vector<4x128xf32>
    %76 = arith.mulf %0, %75 : vector<4x128xf32>
    %c0_39 = arith.constant 0 : index
    %c6_40 = arith.constant 6 : index
    %77 = memref.load %arg3[%c0_39, %c6_40] : memref<1x20xf32, #tpu.memory_space<smem>>
    %78 = vector.broadcast %77 : f32 to vector<4x128xf32>
    %79 = arith.addf %76, %78 : vector<4x128xf32>
    %cst_41 = arith.constant 0.000000e+00 : f32
    %80 = vector.broadcast %cst_41 : f32 to vector<4x128xf32>
    %81 = arith.maximumf %79, %80 : vector<4x128xf32>
    %c0_42 = arith.constant 0 : index
    %c6_43 = arith.constant 6 : index
    %82 = memref.load %arg4[%c0_42, %c6_43] : memref<1x20xf32, #tpu.memory_space<smem>>
    %83 = vector.broadcast %82 : f32 to vector<4x128xf32>
    %84 = arith.mulf %81, %83 : vector<4x128xf32>
    %85 = arith.addf %73, %84 : vector<4x128xf32>
    %c0_44 = arith.constant 0 : index
    %c7 = arith.constant 7 : index
    %86 = memref.load %arg2[%c0_44, %c7] : memref<1x20xf32, #tpu.memory_space<smem>>
    %87 = vector.broadcast %86 : f32 to vector<4x128xf32>
    %88 = arith.mulf %0, %87 : vector<4x128xf32>
    %c0_45 = arith.constant 0 : index
    %c7_46 = arith.constant 7 : index
    %89 = memref.load %arg3[%c0_45, %c7_46] : memref<1x20xf32, #tpu.memory_space<smem>>
    %90 = vector.broadcast %89 : f32 to vector<4x128xf32>
    %91 = arith.addf %88, %90 : vector<4x128xf32>
    %cst_47 = arith.constant 0.000000e+00 : f32
    %92 = vector.broadcast %cst_47 : f32 to vector<4x128xf32>
    %93 = arith.maximumf %91, %92 : vector<4x128xf32>
    %c0_48 = arith.constant 0 : index
    %c7_49 = arith.constant 7 : index
    %94 = memref.load %arg4[%c0_48, %c7_49] : memref<1x20xf32, #tpu.memory_space<smem>>
    %95 = vector.broadcast %94 : f32 to vector<4x128xf32>
    %96 = arith.mulf %93, %95 : vector<4x128xf32>
    %97 = arith.addf %85, %96 : vector<4x128xf32>
    %c0_50 = arith.constant 0 : index
    %c8 = arith.constant 8 : index
    %98 = memref.load %arg2[%c0_50, %c8] : memref<1x20xf32, #tpu.memory_space<smem>>
    %99 = vector.broadcast %98 : f32 to vector<4x128xf32>
    %100 = arith.mulf %0, %99 : vector<4x128xf32>
    %c0_51 = arith.constant 0 : index
    %c8_52 = arith.constant 8 : index
    %101 = memref.load %arg3[%c0_51, %c8_52] : memref<1x20xf32, #tpu.memory_space<smem>>
    %102 = vector.broadcast %101 : f32 to vector<4x128xf32>
    %103 = arith.addf %100, %102 : vector<4x128xf32>
    %cst_53 = arith.constant 0.000000e+00 : f32
    %104 = vector.broadcast %cst_53 : f32 to vector<4x128xf32>
    %105 = arith.maximumf %103, %104 : vector<4x128xf32>
    %c0_54 = arith.constant 0 : index
    %c8_55 = arith.constant 8 : index
    %106 = memref.load %arg4[%c0_54, %c8_55] : memref<1x20xf32, #tpu.memory_space<smem>>
    %107 = vector.broadcast %106 : f32 to vector<4x128xf32>
    %108 = arith.mulf %105, %107 : vector<4x128xf32>
    %109 = arith.addf %97, %108 : vector<4x128xf32>
    %c0_56 = arith.constant 0 : index
    %c9 = arith.constant 9 : index
    %110 = memref.load %arg2[%c0_56, %c9] : memref<1x20xf32, #tpu.memory_space<smem>>
    %111 = vector.broadcast %110 : f32 to vector<4x128xf32>
    %112 = arith.mulf %0, %111 : vector<4x128xf32>
    %c0_57 = arith.constant 0 : index
    %c9_58 = arith.constant 9 : index
    %113 = memref.load %arg3[%c0_57, %c9_58] : memref<1x20xf32, #tpu.memory_space<smem>>
    %114 = vector.broadcast %113 : f32 to vector<4x128xf32>
    %115 = arith.addf %112, %114 : vector<4x128xf32>
    %cst_59 = arith.constant 0.000000e+00 : f32
    %116 = vector.broadcast %cst_59 : f32 to vector<4x128xf32>
    %117 = arith.maximumf %115, %116 : vector<4x128xf32>
    %c0_60 = arith.constant 0 : index
    %c9_61 = arith.constant 9 : index
    %118 = memref.load %arg4[%c0_60, %c9_61] : memref<1x20xf32, #tpu.memory_space<smem>>
    %119 = vector.broadcast %118 : f32 to vector<4x128xf32>
    %120 = arith.mulf %117, %119 : vector<4x128xf32>
    %121 = arith.addf %109, %120 : vector<4x128xf32>
    %c0_62 = arith.constant 0 : index
    %c10 = arith.constant 10 : index
    %122 = memref.load %arg2[%c0_62, %c10] : memref<1x20xf32, #tpu.memory_space<smem>>
    %123 = vector.broadcast %122 : f32 to vector<4x128xf32>
    %124 = arith.mulf %0, %123 : vector<4x128xf32>
    %c0_63 = arith.constant 0 : index
    %c10_64 = arith.constant 10 : index
    %125 = memref.load %arg3[%c0_63, %c10_64] : memref<1x20xf32, #tpu.memory_space<smem>>
    %126 = vector.broadcast %125 : f32 to vector<4x128xf32>
    %127 = arith.addf %124, %126 : vector<4x128xf32>
    %cst_65 = arith.constant 0.000000e+00 : f32
    %128 = vector.broadcast %cst_65 : f32 to vector<4x128xf32>
    %129 = arith.maximumf %127, %128 : vector<4x128xf32>
    %c0_66 = arith.constant 0 : index
    %c10_67 = arith.constant 10 : index
    %130 = memref.load %arg4[%c0_66, %c10_67] : memref<1x20xf32, #tpu.memory_space<smem>>
    %131 = vector.broadcast %130 : f32 to vector<4x128xf32>
    %132 = arith.mulf %129, %131 : vector<4x128xf32>
    %133 = arith.addf %121, %132 : vector<4x128xf32>
    %c0_68 = arith.constant 0 : index
    %c11 = arith.constant 11 : index
    %134 = memref.load %arg2[%c0_68, %c11] : memref<1x20xf32, #tpu.memory_space<smem>>
    %135 = vector.broadcast %134 : f32 to vector<4x128xf32>
    %136 = arith.mulf %0, %135 : vector<4x128xf32>
    %c0_69 = arith.constant 0 : index
    %c11_70 = arith.constant 11 : index
    %137 = memref.load %arg3[%c0_69, %c11_70] : memref<1x20xf32, #tpu.memory_space<smem>>
    %138 = vector.broadcast %137 : f32 to vector<4x128xf32>
    %139 = arith.addf %136, %138 : vector<4x128xf32>
    %cst_71 = arith.constant 0.000000e+00 : f32
    %140 = vector.broadcast %cst_71 : f32 to vector<4x128xf32>
    %141 = arith.maximumf %139, %140 : vector<4x128xf32>
    %c0_72 = arith.constant 0 : index
    %c11_73 = arith.constant 11 : index
    %142 = memref.load %arg4[%c0_72, %c11_73] : memref<1x20xf32, #tpu.memory_space<smem>>
    %143 = vector.broadcast %142 : f32 to vector<4x128xf32>
    %144 = arith.mulf %141, %143 : vector<4x128xf32>
    %145 = arith.addf %133, %144 : vector<4x128xf32>
    %c0_74 = arith.constant 0 : index
    %c12 = arith.constant 12 : index
    %146 = memref.load %arg2[%c0_74, %c12] : memref<1x20xf32, #tpu.memory_space<smem>>
    %147 = vector.broadcast %146 : f32 to vector<4x128xf32>
    %148 = arith.mulf %0, %147 : vector<4x128xf32>
    %c0_75 = arith.constant 0 : index
    %c12_76 = arith.constant 12 : index
    %149 = memref.load %arg3[%c0_75, %c12_76] : memref<1x20xf32, #tpu.memory_space<smem>>
    %150 = vector.broadcast %149 : f32 to vector<4x128xf32>
    %151 = arith.addf %148, %150 : vector<4x128xf32>
    %cst_77 = arith.constant 0.000000e+00 : f32
    %152 = vector.broadcast %cst_77 : f32 to vector<4x128xf32>
    %153 = arith.maximumf %151, %152 : vector<4x128xf32>
    %c0_78 = arith.constant 0 : index
    %c12_79 = arith.constant 12 : index
    %154 = memref.load %arg4[%c0_78, %c12_79] : memref<1x20xf32, #tpu.memory_space<smem>>
    %155 = vector.broadcast %154 : f32 to vector<4x128xf32>
    %156 = arith.mulf %153, %155 : vector<4x128xf32>
    %157 = arith.addf %145, %156 : vector<4x128xf32>
    %c0_80 = arith.constant 0 : index
    %c13 = arith.constant 13 : index
    %158 = memref.load %arg2[%c0_80, %c13] : memref<1x20xf32, #tpu.memory_space<smem>>
    %159 = vector.broadcast %158 : f32 to vector<4x128xf32>
    %160 = arith.mulf %0, %159 : vector<4x128xf32>
    %c0_81 = arith.constant 0 : index
    %c13_82 = arith.constant 13 : index
    %161 = memref.load %arg3[%c0_81, %c13_82] : memref<1x20xf32, #tpu.memory_space<smem>>
    %162 = vector.broadcast %161 : f32 to vector<4x128xf32>
    %163 = arith.addf %160, %162 : vector<4x128xf32>
    %cst_83 = arith.constant 0.000000e+00 : f32
    %164 = vector.broadcast %cst_83 : f32 to vector<4x128xf32>
    %165 = arith.maximumf %163, %164 : vector<4x128xf32>
    %c0_84 = arith.constant 0 : index
    %c13_85 = arith.constant 13 : index
    %166 = memref.load %arg4[%c0_84, %c13_85] : memref<1x20xf32, #tpu.memory_space<smem>>
    %167 = vector.broadcast %166 : f32 to vector<4x128xf32>
    %168 = arith.mulf %165, %167 : vector<4x128xf32>
    %169 = arith.addf %157, %168 : vector<4x128xf32>
    %c0_86 = arith.constant 0 : index
    %c14 = arith.constant 14 : index
    %170 = memref.load %arg2[%c0_86, %c14] : memref<1x20xf32, #tpu.memory_space<smem>>
    %171 = vector.broadcast %170 : f32 to vector<4x128xf32>
    %172 = arith.mulf %0, %171 : vector<4x128xf32>
    %c0_87 = arith.constant 0 : index
    %c14_88 = arith.constant 14 : index
    %173 = memref.load %arg3[%c0_87, %c14_88] : memref<1x20xf32, #tpu.memory_space<smem>>
    %174 = vector.broadcast %173 : f32 to vector<4x128xf32>
    %175 = arith.addf %172, %174 : vector<4x128xf32>
    %cst_89 = arith.constant 0.000000e+00 : f32
    %176 = vector.broadcast %cst_89 : f32 to vector<4x128xf32>
    %177 = arith.maximumf %175, %176 : vector<4x128xf32>
    %c0_90 = arith.constant 0 : index
    %c14_91 = arith.constant 14 : index
    %178 = memref.load %arg4[%c0_90, %c14_91] : memref<1x20xf32, #tpu.memory_space<smem>>
    %179 = vector.broadcast %178 : f32 to vector<4x128xf32>
    %180 = arith.mulf %177, %179 : vector<4x128xf32>
    %181 = arith.addf %169, %180 : vector<4x128xf32>
    %c0_92 = arith.constant 0 : index
    %c15 = arith.constant 15 : index
    %182 = memref.load %arg2[%c0_92, %c15] : memref<1x20xf32, #tpu.memory_space<smem>>
    %183 = vector.broadcast %182 : f32 to vector<4x128xf32>
    %184 = arith.mulf %0, %183 : vector<4x128xf32>
    %c0_93 = arith.constant 0 : index
    %c15_94 = arith.constant 15 : index
    %185 = memref.load %arg3[%c0_93, %c15_94] : memref<1x20xf32, #tpu.memory_space<smem>>
    %186 = vector.broadcast %185 : f32 to vector<4x128xf32>
    %187 = arith.addf %184, %186 : vector<4x128xf32>
    %cst_95 = arith.constant 0.000000e+00 : f32
    %188 = vector.broadcast %cst_95 : f32 to vector<4x128xf32>
    %189 = arith.maximumf %187, %188 : vector<4x128xf32>
    %c0_96 = arith.constant 0 : index
    %c15_97 = arith.constant 15 : index
    %190 = memref.load %arg4[%c0_96, %c15_97] : memref<1x20xf32, #tpu.memory_space<smem>>
    %191 = vector.broadcast %190 : f32 to vector<4x128xf32>
    %192 = arith.mulf %189, %191 : vector<4x128xf32>
    %193 = arith.addf %181, %192 : vector<4x128xf32>
    %c0_98 = arith.constant 0 : index
    %c16 = arith.constant 16 : index
    %194 = memref.load %arg2[%c0_98, %c16] : memref<1x20xf32, #tpu.memory_space<smem>>
    %195 = vector.broadcast %194 : f32 to vector<4x128xf32>
    %196 = arith.mulf %0, %195 : vector<4x128xf32>
    %c0_99 = arith.constant 0 : index
    %c16_100 = arith.constant 16 : index
    %197 = memref.load %arg3[%c0_99, %c16_100] : memref<1x20xf32, #tpu.memory_space<smem>>
    %198 = vector.broadcast %197 : f32 to vector<4x128xf32>
    %199 = arith.addf %196, %198 : vector<4x128xf32>
    %cst_101 = arith.constant 0.000000e+00 : f32
    %200 = vector.broadcast %cst_101 : f32 to vector<4x128xf32>
    %201 = arith.maximumf %199, %200 : vector<4x128xf32>
    %c0_102 = arith.constant 0 : index
    %c16_103 = arith.constant 16 : index
    %202 = memref.load %arg4[%c0_102, %c16_103] : memref<1x20xf32, #tpu.memory_space<smem>>
    %203 = vector.broadcast %202 : f32 to vector<4x128xf32>
    %204 = arith.mulf %201, %203 : vector<4x128xf32>
    %205 = arith.addf %193, %204 : vector<4x128xf32>
    %c0_104 = arith.constant 0 : index
    %c17 = arith.constant 17 : index
    %206 = memref.load %arg2[%c0_104, %c17] : memref<1x20xf32, #tpu.memory_space<smem>>
    %207 = vector.broadcast %206 : f32 to vector<4x128xf32>
    %208 = arith.mulf %0, %207 : vector<4x128xf32>
    %c0_105 = arith.constant 0 : index
    %c17_106 = arith.constant 17 : index
    %209 = memref.load %arg3[%c0_105, %c17_106] : memref<1x20xf32, #tpu.memory_space<smem>>
    %210 = vector.broadcast %209 : f32 to vector<4x128xf32>
    %211 = arith.addf %208, %210 : vector<4x128xf32>
    %cst_107 = arith.constant 0.000000e+00 : f32
    %212 = vector.broadcast %cst_107 : f32 to vector<4x128xf32>
    %213 = arith.maximumf %211, %212 : vector<4x128xf32>
    %c0_108 = arith.constant 0 : index
    %c17_109 = arith.constant 17 : index
    %214 = memref.load %arg4[%c0_108, %c17_109] : memref<1x20xf32, #tpu.memory_space<smem>>
    %215 = vector.broadcast %214 : f32 to vector<4x128xf32>
    %216 = arith.mulf %213, %215 : vector<4x128xf32>
    %217 = arith.addf %205, %216 : vector<4x128xf32>
    %c0_110 = arith.constant 0 : index
    %c18 = arith.constant 18 : index
    %218 = memref.load %arg2[%c0_110, %c18] : memref<1x20xf32, #tpu.memory_space<smem>>
    %219 = vector.broadcast %218 : f32 to vector<4x128xf32>
    %220 = arith.mulf %0, %219 : vector<4x128xf32>
    %c0_111 = arith.constant 0 : index
    %c18_112 = arith.constant 18 : index
    %221 = memref.load %arg3[%c0_111, %c18_112] : memref<1x20xf32, #tpu.memory_space<smem>>
    %222 = vector.broadcast %221 : f32 to vector<4x128xf32>
    %223 = arith.addf %220, %222 : vector<4x128xf32>
    %cst_113 = arith.constant 0.000000e+00 : f32
    %224 = vector.broadcast %cst_113 : f32 to vector<4x128xf32>
    %225 = arith.maximumf %223, %224 : vector<4x128xf32>
    %c0_114 = arith.constant 0 : index
    %c18_115 = arith.constant 18 : index
    %226 = memref.load %arg4[%c0_114, %c18_115] : memref<1x20xf32, #tpu.memory_space<smem>>
    %227 = vector.broadcast %226 : f32 to vector<4x128xf32>
    %228 = arith.mulf %225, %227 : vector<4x128xf32>
    %229 = arith.addf %217, %228 : vector<4x128xf32>
    %c0_116 = arith.constant 0 : index
    %c19 = arith.constant 19 : index
    %230 = memref.load %arg2[%c0_116, %c19] : memref<1x20xf32, #tpu.memory_space<smem>>
    %231 = vector.broadcast %230 : f32 to vector<4x128xf32>
    %232 = arith.mulf %0, %231 : vector<4x128xf32>
    %c0_117 = arith.constant 0 : index
    %c19_118 = arith.constant 19 : index
    %233 = memref.load %arg3[%c0_117, %c19_118] : memref<1x20xf32, #tpu.memory_space<smem>>
    %234 = vector.broadcast %233 : f32 to vector<4x128xf32>
    %235 = arith.addf %232, %234 : vector<4x128xf32>
    %cst_119 = arith.constant 0.000000e+00 : f32
    %236 = vector.broadcast %cst_119 : f32 to vector<4x128xf32>
    %237 = arith.maximumf %235, %236 : vector<4x128xf32>
    %c0_120 = arith.constant 0 : index
    %c19_121 = arith.constant 19 : index
    %238 = memref.load %arg4[%c0_120, %c19_121] : memref<1x20xf32, #tpu.memory_space<smem>>
    %239 = vector.broadcast %238 : f32 to vector<4x128xf32>
    %240 = arith.mulf %237, %239 : vector<4x128xf32>
    %241 = arith.addf %229, %240 : vector<4x128xf32>
    %c0_122 = arith.constant 0 : index
    %c0_123 = arith.constant 0 : index
    %242 = vector.load %arg6[%c0_122, %c0_123] : memref<4x4xf32, #tpu.memory_space<vmem>>, vector<4x4xf32>
    %cst_124 = arith.constant dense<0.000000e+00> : vector<4x128xf32>
    %243 = tpu.matmul %242, %241, %cst_124 {dimension_numbers = #tpu.dot_dimension_numbers<[1], [0], [0], [1], [0, 0, 1, 1], [], []>} : vector<4x4xf32>, vector<4x128xf32>, vector<4x128xf32> -> vector<4x128xf32>
    %c0_125 = arith.constant 0 : index
    %c0_126 = arith.constant 0 : index
    %244 = memref.load %arg5[%c0_125, %c0_126] : memref<1x1xf32, #tpu.memory_space<smem>>
    %245 = vector.broadcast %244 : f32 to vector<4x128xf32>
    %246 = arith.addf %243, %245 : vector<4x128xf32>
    %c0_127 = arith.constant 0 : index
    %c0_128 = arith.constant 0 : index
    %247 = vector.load %arg8[%c0_127, %c0_128] : memref<4x128xf32, #tpu.memory_space<vmem>>, vector<4x128xf32>
    tpu.vector_store %arg8[%c0_127, %c0_128], %246 {strides = array<i32>} : memref<4x128xf32, #tpu.memory_space<vmem>>, vector<4x128xf32>,
    %248 = arith.subf %246, %0 : vector<4x128xf32>
    %c1_i32 = arith.constant 1 : i32
    %249 = arith.cmpi ne, %arg0, %c1_i32 : i32
    %250 = arith.extui %249 : i1 to i32
    %c0_i32 = arith.constant 0 : i32
    %251 = arith.cmpi ne, %250, %c0_i32 : i32
    scf.if %251 {
      %255 = arith.mulf %248, %248 : vector<4x128xf32>
      %cst_131 = arith.constant dense<0.000000e+00> : vector<128xf32>
      %256 = vector.multi_reduction <add>, %255, %cst_131 [0] : vector<4x128xf32> to vector<128xf32>
      %257 = vector.shape_cast %256 : vector<128xf32> to vector<1x128xf32>
      %258 = vector.shape_cast %257 : vector<1x128xf32> to vector<1x1x128xf32>
      %c0_132 = arith.constant 0 : index
      %c0_133 = arith.constant 0 : index
      %c0_134 = arith.constant 0 : index
      %259 = vector.load %arg7[%c0_132, %c0_133, %c0_134] : memref<1x1x128xf32, #tpu.memory_space<vmem>>, vector<1x1x128xf32>
      tpu.vector_store %arg7[%c0_132, %c0_133, %c0_134], %258 {strides = array<i32>} : memref<1x1x128xf32, #tpu.memory_space<vmem>>, vector<1x1x128xf32>,
    } else {
    }
    %c1_i32_129 = arith.constant 1 : i32
    %252 = arith.cmpi eq, %arg0, %c1_i32_129 : i32
    %253 = arith.extui %252 : i1 to i32
    %c0_i32_130 = arith.constant 0 : i32
    %254 = arith.cmpi ne, %253, %c0_i32_130 : i32
    scf.if %254 {
      %255 = tpu.iota {dimensions = array<i32: 1>} : vector<4x128xi32>
      %c128_i32 = arith.constant 128 : i32
      %256 = vector.broadcast %c128_i32 : i32 to vector<4x128xi32>
      %257 = arith.addi %256, %255 : vector<4x128xi32>
      %c200_i32 = arith.constant 200 : i32
      %258 = vector.broadcast %c200_i32 : i32 to vector<4x128xi32>
      %259 = arith.cmpi slt, %257, %258 : vector<4x128xi32>
      %cst_131 = arith.constant 0.000000e+00 : f32
      %260 = vector.broadcast %cst_131 : f32 to vector<4x128xf32>
      %261 = arith.select %259, %248, %260 : vector<4x128xi1>, vector<4x128xf32>
      %262 = arith.mulf %261, %261 : vector<4x128xf32>
      %cst_132 = arith.constant dense<0.000000e+00> : vector<128xf32>
      %263 = vector.multi_reduction <add>, %262, %cst_132 [0] : vector<4x128xf32> to vector<128xf32>
      %264 = vector.shape_cast %263 : vector<128xf32> to vector<1x128xf32>
      %265 = vector.shape_cast %264 : vector<1x128xf32> to vector<1x1x128xf32>
      %c0_133 = arith.constant 0 : index
      %c0_134 = arith.constant 0 : index
      %c0_135 = arith.constant 0 : index
      %266 = vector.load %arg7[%c0_133, %c0_134, %c0_135] : memref<1x1x128xf32, #tpu.memory_space<vmem>>, vector<1x1x128xf32>
      tpu.vector_store %arg7[%c0_133, %c0_134, %c0_135], %265 {strides = array<i32>} : memref<1x1x128xf32, #tpu.memory_space<vmem>>, vector<1x1x128xf32>,
    } else {
    }
    return
  }
  func.func @transform_0(%arg0: i32) -> (i32, i32) {
    %c0_i32 = arith.constant 0 : i32
    %c0_i32_0 = arith.constant 0 : i32
    return %c0_i32, %arg0 : i32, i32
  }
  func.func @transform_1(%arg0: i32) -> (i32, i32) {
    %c0_i32 = arith.constant 0 : i32
    %c0_i32_0 = arith.constant 0 : i32
    %c0_i32_1 = arith.constant 0 : i32
    return %c0_i32, %c0_i32_0 : i32, i32
  }
  func.func @transform_2(%arg0: i32) -> (i32, i32) {
    %c0_i32 = arith.constant 0 : i32
    %c0_i32_0 = arith.constant 0 : i32
    %c0_i32_1 = arith.constant 0 : i32
    return %c0_i32, %c0_i32_0 : i32, i32
  }
  func.func @transform_3(%arg0: i32) -> (i32, i32) {
    %c0_i32 = arith.constant 0 : i32
    %c0_i32_0 = arith.constant 0 : i32
    %c0_i32_1 = arith.constant 0 : i32
    return %c0_i32, %c0_i32_0 : i32, i32
  }
  func.func @transform_4(%arg0: i32) -> (i32, i32) {
    %c0_i32 = arith.constant 0 : i32
    %c0_i32_0 = arith.constant 0 : i32
    %c0_i32_1 = arith.constant 0 : i32
    return %c0_i32, %c0_i32_0 : i32, i32
  }
  func.func @transform_5(%arg0: i32) -> (i32, i32) {
    %c0_i32 = arith.constant 0 : i32
    %c0_i32_0 = arith.constant 0 : i32
    %c0_i32_1 = arith.constant 0 : i32
    return %c0_i32, %c0_i32_0 : i32, i32
  }
  func.func @transform_6(%arg0: i32) -> (i32, i32, i32) {
    %c0_i32 = arith.constant 0 : i32
    %c0_i32_0 = arith.constant 0 : i32
    %c0_i32_1 = arith.constant 0 : i32
    return %arg0, %c0_i32, %c0_i32_0 : i32, i32, i32
  }
  func.func @transform_7(%arg0: i32) -> (i32, i32) {
    %c0_i32 = arith.constant 0 : i32
    %c0_i32_0 = arith.constant 0 : i32
    return %c0_i32, %arg0 : i32, i32
  }
}

</mosaic_0001>

<bundles_post_ra>
// kernel: tpu_custom_call.1
= control target key start
LH: loop header
LB: loop body
LE: loop exit
PB: predicated region body
PF: predicated region fallthrough
CT: control target
= control target key end

     0   :  { %s1452_s0 = inlined_call_operand.hbm [shape: f32[4,256], index: 0, kind: input, shape index: {}]   ;;  %s1453_s1 = inlined_call_operand.vmem [shape: f32[1,20], index: 1, kind: input, shape index: {}]   ;;  %s1454_s2 = inlined_call_operand.hbm [shape: f32[1,20], index: 2, kind: input, shape index: {}]   ;;  %s1455_s3 = inlined_call_operand.hbm [shape: f32[1,20], index: 3, kind: input, shape index: {}]   ;;  %s1456_s4 = inlined_call_operand.<no memory space> [shape: f32[1,1], index: 4, kind: input, shape index: {}]   ;;  %s1457_s5 = inlined_call_operand.vmem [shape: f32[4,4], index: 5, kind: input, shape index: {}]   ;;  %s1458_s6 = inlined_call_operand.hbm [shape: f32[2,1,128], index: 6, kind: output, shape index: {0}]   ;;  %s1459_s7 = inlined_call_operand.hbm [shape: f32[4,256], index: 7, kind: output, shape index: {1}]  }
   0x1   :  { %1461 = sst [smem:[#allocation21_spill]] %s1452_s0 }
   0x2   :  { %13 = sst [smem:[#allocation2]] %s1456_s4 }
   0x3   :  { %14 = vsyncpa [#allocation4], 0 }
   0x4   :  { %16 = vsyncpa [#allocation4 + $0x1], 0 }
   0x5   :  { %17 = vsyncpa [#allocation7], 0 }
   0x6   :  { %18 = vsyncpa [#allocation6], 0 }
   0x7   :  { %19 = vsyncpa [#allocation11], 0 }
   0x8   :  { %20 = vsyncpa [#allocation5], 0 }
   0x9   :  { %22 = vsyncpa [#allocation5 + $0x1], 0 }
   0xa   :  { %23 = vsyncpa [#allocation14], 0 }
   0xb   :  { %25 = vsyncpa [#allocation14 + $0x1], 0  ;;  %s1191_s26 = smov 0   ;;  %s1193_s27 = smov 0  }
   0xc   :  { %s1195_s28 = smov 0   ;;  %s1197_s29 = smov 0  }
   0xd LB: > { %s1212_s4 = sadd.s32 4294967295, %s1143_s29   ;;  %s797_s30 = sadd.s32 4294967294, %s1143_s29   ;;  %s1143_s29 = sphi %s1197_s29, %s1473_s29   ;;  %s1139_s28 = sphi %s1195_s28, %s1472_s28   ;;  %s1135_s27 = sphi %s1193_s27, %s1471_s27   ;;  %s1131_s26 = sphi %s1191_s26, %s1470_s26  }
   0xe   : > { %p51_p0 = scmp.ne.s32.totalorder %s1135_s27, %s1131_s26  ;;  %p52_p1 = scmp.eq.s32.totalorder %s1212_s4, 0 }
   0xf   : > { %p1460_p2 = scmp.eq.s32.totalorder %s1212_s4, 1  ;;  %p186_p3 = scmp.eq.s32.totalorder %s797_s30, 1 }
  0x10   : > { %p1221_p4 = por %p52_p1, %p51_p0  ;;  %p798_p5 = scmp.ge.s32.totalorder %s1143_s29, 1 }
  0x11   : > { %p1226_p6 = por %p186_p3, %p51_p0  ;;  %p219_p7 = scmp.lt.s32.totalorder %s1143_s29, 3 }
  0x12   : > { %s231_s12 = sshll.u32 %s1453_s1, 4  ;;  %s241_s16 = sshll.u32 %s1454_s2, 4  ;;  %s232_s12 = int_to_ptr.vmem [resolvable:$true] %s231_s12  ;;  %s242_s16 = int_to_ptr.hbm [resolvable:$true] %s241_s16 }
  0x13   : > { %p1234_p8 = pnand %p798_p5, %p219_p7  ;;  %s251_s19 = sshll.u32 %s1455_s3, 4  ;;  %s252_s19 = int_to_ptr.hbm [resolvable:$true] %s251_s19 }
  0x14   : > { %s1145_s20 = smov [#allocation8]   ;;  %s1146_s21 = smov [#allocation9]  }
  0x15   : > { %p894_p10 = pneg %p1234_p8  ;;  %s1147_s22 = smov [#allocation10]  }
  0x16   : > { %s1250_s23 = sadd.s32 1, %s1143_s29   ;;  %s38_s25 = sadd.s32 1, %s1139_s28 }
  0x17   : > { %p895_p11 = pnand %p894_p10, %p52_p1  ;;  %s35_s24 = ssub.s32 %s1143_s29, %s1250_s23 }
  0x18   : > { %p36_p12 = scmp.eq.s32.totalorder %s35_s24, 0  ;;  %p45_p13 = scmp.ne.s32.totalorder %s1139_s28, %s1135_s27 }
  0x19   : > { %897 = dma.vmem_to_smem (!%p895_p11), %s232_s12, 16, %s1145_s20, [#allocation7]  }
  0x1a   : > { %900 = dma.hbm_to_smem (!%p895_p11), %s242_s16, 16, %s1146_s21, [#allocation6]  }
  0x1b   : > { %903 = dma.hbm_to_smem (!%p895_p11), %s252_s19, 16, %s1147_s22, [#allocation11]  }
  0x1c   : > { %p46_p0 = scmp.eq.s32.totalorder %s1143_s29, 0  ;;  %p1263_p3 = por %p1460_p2, %p45_p13 }
  0x1d   : > { %s1259_s30 = scalar_select %p36_p12, %s1139_s28, %s38_s25  }
  0x1e   : > { %p918_p5 = scmp.lt.s32.totalorder %s1143_s29, 2  ;;  %s268_s11 = sand.u32 1, %s1139_s28  }
  0x1f   : > { %s804_s12 = sshll.u32 %s1143_s29, 2  ;;  %p47_p7 = por %p46_p0, %p45_p13 }
  0x20   : > { %s803_s14 = sshll.u32 %s268_s11, 2  ;;  %s1466_s0 = sld [smem:[#allocation21_spill]] }
  0x21   : > { %s272_s19 = scalar_lea.vmem [#allocation3], %s803_s14  ;;  %p1273_p10 = pnand %p918_p5, %p47_p7 }
  0x22   : > { %s280_s20 = sshll.u32 %s272_s19, 4  ;;  %s269_s22 = scalar_lea.sflag [#allocation4], %s268_s11  ;;  %s281_s20 = int_to_ptr.vmem [resolvable:$true] %s280_s20 }
  0x23   : > { %p1007_p12 = pneg %p1273_p10 }
  0x26   : > { %s276_s17 = scalar_lea.hbm %s1466_s0, %s804_s12  ;;  %s1010_s14 = scalar_lea.hbm %s1466_s0, 8 }
  0x27   : > { %s278_s18 = sshll.u32 %s276_s17, 4  ;;  %s279_s18 = int_to_ptr.hbm [resolvable:$true] %s278_s18 }
  0x28   : > { %s1003_s24 = sshra.s32 %s279_s18, 4  ;;  %s1004_s24 = int_to_ptr.hbm [resolvable:$true] %s1003_s24 }
  0x29   : > { %s1005_s25 = scalar_lea.hbm %s1004_s24, 4  ;;  %p1011_p5 = scmp.lt.s32.totalorder %s1004_s24, %s1466_s0 }
  0x2a   : > { %p1006_p11 = scmp.ne.s32.totalorder %s1004_s24, %s1005_s25  ;;  %p1012_p7 = scmp.lt.s32.totalorder %s1010_s14, %s1005_s25 }
  0x2c   : > { %p1008_p13 = pnand %p1007_p12, %p1006_p11  ;;  %p1013_p9 = por %p1012_p7, %p1011_p5 }
  0x2e   : > { %p1009_p0 = pneg %p1008_p13 }
  0x30   : > { %p1014_p2 = pnand %p1013_p9, %p1009_p0 }
  0x32   : > { %1017 = shalt.err (!%p1014_p2)
}
  0x33   : > { %907 = dma.hbm_to_vmem [thread:$0]  (!%p1273_p10), %s279_s18, 64, %s281_s20, %s269_s22  }
  0x34   : > { %289 = sbr.rel (%p1234_p8) target bundleno = 347 (0x15b), region = 44  ;;  %s1290_s11 = sand.u32 (!%p1234_p8), 1, %s1135_s27  }
  0x35   : > { %s806_s19 = sshll.u32 (!%p1234_p8), %s1290_s11, 2  ;;  %s292_s12 = scalar_lea.sflag (!%p1234_p8), [#allocation4], %s1290_s11 }
  0x36   : > { %s295_s24 = scalar_lea.vmem (!%p1234_p8), [#allocation3], %s806_s19 }
  0x39   : > { %1106 = dma.done.wait (%p1221_p4), %s292_s12, 64  }
  0x3a   : > { %1108 = vsyncadd (%p1221_p4), %s292_s12, 4294967232 }
  0x3b   : > { %1110 = dma.done.wait (%p52_p1), [#allocation7], 16  }
  0x3c   : > { %1112 = vsyncadd (%p52_p1), [#allocation7], 4294967280 }
  0x3d   : > { %1114 = dma.done.wait (%p52_p1), [#allocation6], 16  }
  0x3e   : > { %1116 = vsyncadd (%p52_p1), [#allocation6], 4294967280 }
  0x3f   : > { %1118 = dma.done.wait (%p52_p1), [#allocation11], 16  }
  0x40   : > { %1120 = vsyncadd (%p52_p1), [#allocation11], 4294967280 }
  0x41   : > { %316 = sfence }
  0x42   : > { %s348_s8 = sld [smem:[#allocation8]]  ;;  %v1312_v0 = vld [vmem:[%s295_s24] sm:$0xf]  ;;  %vm575_vm0 = vcmask 1043456   ;;  %vm571_vm1 = vcmask 31744   ;;  %p1468_p1 = scmp.eq.s32.totalorder %s1212_s4, 1 }
  0x43   : > { %s351_s13 = sld [smem:[#allocation9]] }
  0x44   : > { %s355_s18 = sld [smem:[#allocation10]] }
  0x45   : > { %s811_s20 = sld [smem:[#allocation8 + $0x1]] }
  0x46   : > { %s812_s21 = sld [smem:[#allocation9 + $0x1]] }
  0x47   : > { %s813_s22 = sld [smem:[#allocation10 + $0x1]] }
  0x48   : > { %v349_v1 = vstv %s348_s8  ;;  %s814_s25 = sld [smem:[#allocation8 + $0x2]] }
  0x49   : > { %v350_v2 = vmul.f32 %v349_v1, %v1312_v0  ;;  %v352_v3 = vstv %s351_s13  ;;  %s815_s15 = sld [smem:[#allocation9 + $0x2]] }
  0x4a   : > { %s1315_s14 = sld [smem:[#allocation10 + $0x2]]  ;;  %v356_v9 = vstv %s355_s18 }
  0x4b   : > { %v353_v4 = vadd.f32 %v352_v3, %v350_v2  ;;  %v360_v5 = vstv %s811_s20  ;;  %s817_s16 = sld [smem:[#allocation8 + $0x3]] }
  0x4c   : > { %v361_v6 = vmul.f32 %v360_v5, %v1312_v0  ;;  %v363_v7 = vstv %s812_s21  ;;  %s818_s17 = sld [smem:[#allocation9 + $0x3]] }
  0x4d   : > { %v354_v8 = vmax.f32 %v353_v4, 0.0  ;;  %s1318_s12 = sld [smem:[#allocation10 + $0x3]]  ;;  %v367_v12 = vstv %s813_s22 }
  0x4e   : > { %v364_v10 = vadd.f32 %v363_v7, %v361_v6  ;;  %v371_v11 = vstv %s814_s25  ;;  %s820_s24 = sld [smem:[#allocation8 + $0x4]] }
  0x4f   : > { %v372_v13 = vmul.f32 %v371_v11, %v1312_v0  ;;  %v374_v14 = vstv %s815_s15  ;;  %s821_s8 = sld [smem:[#allocation9 + $0x4]]  ;;  %v357_v15 = vmul.f32 %v356_v9, %v354_v8 }
  0x50   : > { %v365_v16 = vmax.f32 %v364_v10, 0.0  ;;  %s1321_s13 = sld [smem:[#allocation10 + $0x4]]  ;;  %v378_v20 = vstv %s1315_s14 }
  0x51   : > { %v375_v17 = vadd.f32 %v374_v14, %v372_v13  ;;  %v382_v18 = vstv %s817_s16  ;;  %s823_s20 = sld [smem:[#allocation8 + $0x5]] }
  0x52   : > { %v368_v19 = vmul.f32 %v367_v12, %v365_v16  ;;  %v383_v21 = vmul.f32 %v382_v18, %v1312_v0  ;;  %v385_v22 = vstv %s818_s17  ;;  %s824_s18 = sld [smem:[#allocation9 + $0x5]] }
  0x53   : > { %v376_v23 = vmax.f32 %v375_v17, 0.0  ;;  %s1325_s21 = sld [smem:[#allocation10 + $0x5]]  ;;  %v389_v28 = vstv %s1318_s12 }
  0x54   : > { %v369_v24 = vadd.f32 %v368_v19, %v357_v15  ;;  %v386_v25 = vadd.f32 %v385_v22, %v383_v21  ;;  %v393_v26 = vstv %s820_s24  ;;  %s826_s22 = sld [smem:[#allocation8 + $0x6]] }
  0x55   : > { %v379_v27 = vmul.f32 %v378_v20, %v376_v23  ;;  %v394_v29 = vmul.f32 %v393_v26, %v1312_v0  ;;  %v396_v30 = vstv %s821_s8  ;;  %s827_s25 = sld [smem:[#allocation9 + $0x6]] }
  0x56   : > { %v387_v31 = vmax.f32 %v386_v25, 0.0  ;;  %s1329_s15 = sld [smem:[#allocation10 + $0x6]]  ;;  %v400_v36 = vstv %s1321_s13 }
  0x57   : > { %v380_v32 = vadd.f32 %v379_v27, %v369_v24  ;;  %v397_v33 = vadd.f32 %v396_v30, %v394_v29  ;;  %v404_v34 = vstv %s823_s20  ;;  %s829_s14 = sld [smem:[#allocation8 + $0x7]] }
  0x58   : > { %v390_v35 = vmul.f32 %v389_v28, %v387_v31  ;;  %v405_v37 = vmul.f32 %v404_v34, %v1312_v0  ;;  %v407_v38 = vstv %s824_s18  ;;  %s830_s16 = sld [smem:[#allocation9 + $0x7]] }
  0x59   : > { %v398_v39 = vmax.f32 %v397_v33, 0.0  ;;  %s1333_s17 = sld [smem:[#allocation10 + $0x7]]  ;;  %v411_v44 = vstv %s1325_s21 }
  0x5a   : > { %v391_v40 = vadd.f32 %v390_v35, %v380_v32  ;;  %v408_v41 = vadd.f32 %v407_v38, %v405_v37  ;;  %v415_v42 = vstv %s826_s22  ;;  %s832_s12 = sld [smem:[#allocation8 + $0x8]] }
  0x5b   : > { %v401_v43 = vmul.f32 %v400_v36, %v398_v39  ;;  %v416_v45 = vmul.f32 %v415_v42, %v1312_v0  ;;  %v418_v46 = vstv %s827_s25  ;;  %s833_s24 = sld [smem:[#allocation9 + $0x8]] }
  0x5c   : > { %v409_v47 = vmax.f32 %v408_v41, 0.0  ;;  %s1337_s8 = sld [smem:[#allocation10 + $0x8]]  ;;  %v422_v52 = vstv %s1329_s15 }
  0x5d   : > { %v402_v48 = vadd.f32 %v401_v43, %v391_v40  ;;  %v419_v49 = vadd.f32 %v418_v46, %v416_v45  ;;  %v426_v50 = vstv %s829_s14  ;;  %s835_s13 = sld [smem:[#allocation8 + $0x9]] }
  0x5e   : > { %v412_v51 = vmul.f32 %v411_v44, %v409_v47  ;;  %v427_v53 = vmul.f32 %v426_v50, %v1312_v0  ;;  %v429_v54 = vstv %s830_s16  ;;  %s836_s20 = sld [smem:[#allocation9 + $0x9]] }
  0x5f   : > { %v420_v55 = vmax.f32 %v419_v49, 0.0  ;;  %s1341_s18 = sld [smem:[#allocation10 + $0x9]]  ;;  %v433_v60 = vstv %s1333_s17 }
  0x60   : > { %v413_v56 = vadd.f32 %v412_v51, %v402_v48  ;;  %v430_v57 = vadd.f32 %v429_v54, %v427_v53  ;;  %v437_v58 = vstv %s832_s12  ;;  %s838_s21 = sld [smem:[#allocation8 + $0xa]] }
  0x61   : > { %v423_v59 = vmul.f32 %v422_v52, %v420_v55  ;;  %v438_v61 = vmul.f32 %v437_v58, %v1312_v0  ;;  %v440_v62 = vstv %s833_s24  ;;  %s839_s22 = sld [smem:[#allocation9 + $0xa]] }
  0x62   : > { %v431_v63 = vmax.f32 %v430_v57, 0.0  ;;  %s1345_s25 = sld [smem:[#allocation10 + $0xa]]  ;;  %v444_v5 = vstv %s1337_s8 }
  0x63   : > { %v424_v1 = vadd.f32 %v423_v59, %v413_v56  ;;  %v441_v2 = vadd.f32 %v440_v62, %v438_v61  ;;  %v448_v3 = vstv %s835_s13  ;;  %s841_s15 = sld [smem:[#allocation8 + $0xb]] }
  0x64   : > { %v434_v4 = vmul.f32 %v433_v60, %v431_v63  ;;  %v449_v6 = vmul.f32 %v448_v3, %v1312_v0  ;;  %v451_v7 = vstv %s836_s20  ;;  %s842_s14 = sld [smem:[#allocation9 + $0xb]] }
  0x65   : > { %v442_v8 = vmax.f32 %v441_v2, 0.0  ;;  %s1349_s16 = sld [smem:[#allocation10 + $0xb]]  ;;  %v455_v13 = vstv %s1341_s18 }
  0x66   : > { %v435_v9 = vadd.f32 %v434_v4, %v424_v1  ;;  %v452_v10 = vadd.f32 %v451_v7, %v449_v6  ;;  %v459_v11 = vstv %s838_s21  ;;  %s844_s17 = sld [smem:[#allocation8 + $0xc]] }
  0x67   : > { %v445_v12 = vmul.f32 %v444_v5, %v442_v8  ;;  %v460_v14 = vmul.f32 %v459_v11, %v1312_v0  ;;  %v462_v15 = vstv %s839_s22  ;;  %s845_s12 = sld [smem:[#allocation9 + $0xc]] }
  0x68   : > { %v453_v16 = vmax.f32 %v452_v10, 0.0  ;;  %s1353_s24 = sld [smem:[#allocation10 + $0xc]]  ;;  %v466_v21 = vstv %s1345_s25 }
  0x69   : > { %v446_v17 = vadd.f32 %v445_v12, %v435_v9  ;;  %v463_v18 = vadd.f32 %v462_v15, %v460_v14  ;;  %v470_v19 = vstv %s841_s15  ;;  %s847_s8 = sld [smem:[#allocation8 + $0xd]] }
  0x6a   : > { %v456_v20 = vmul.f32 %v455_v13, %v453_v16  ;;  %v471_v22 = vmul.f32 %v470_v19, %v1312_v0  ;;  %v473_v23 = vstv %s842_s14  ;;  %s848_s13 = sld [smem:[#allocation9 + $0xd]] }
  0x6b   : > { %v464_v24 = vmax.f32 %v463_v18, 0.0  ;;  %s1357_s20 = sld [smem:[#allocation10 + $0xd]]  ;;  %v477_v29 = vstv %s1349_s16 }
  0x6c   : > { %v457_v25 = vadd.f32 %v456_v20, %v446_v17  ;;  %v474_v26 = vadd.f32 %v473_v23, %v471_v22  ;;  %v481_v27 = vstv %s844_s17  ;;  %s850_s18 = sld [smem:[#allocation8 + $0xe]] }
  0x6d   : > { %v467_v28 = vmul.f32 %v466_v21, %v464_v24  ;;  %v482_v30 = vmul.f32 %v481_v27, %v1312_v0  ;;  %v484_v31 = vstv %s845_s12  ;;  %s851_s21 = sld [smem:[#allocation9 + $0xe]] }
  0x6e   : > { %v475_v32 = vmax.f32 %v474_v26, 0.0  ;;  %s1361_s22 = sld [smem:[#allocation10 + $0xe]]  ;;  %v488_v37 = vstv %s1353_s24 }
  0x6f   : > { %v468_v33 = vadd.f32 %v467_v28, %v457_v25  ;;  %v485_v34 = vadd.f32 %v484_v31, %v482_v30  ;;  %v492_v35 = vstv %s847_s8  ;;  %s853_s25 = sld [smem:[#allocation8 + $0xf]] }
  0x70   : > { %v478_v36 = vmul.f32 %v477_v29, %v475_v32  ;;  %v493_v38 = vmul.f32 %v492_v35, %v1312_v0  ;;  %v495_v39 = vstv %s848_s13  ;;  %s854_s15 = sld [smem:[#allocation9 + $0xf]] }
  0x71   : > { %v486_v40 = vmax.f32 %v485_v34, 0.0  ;;  %s1365_s14 = sld [smem:[#allocation10 + $0xf]]  ;;  %v499_v45 = vstv %s1357_s20  ;;  %v568_v34 = vld [vmem:[%s1457_s5] sm:$0xf] }
  0x72   : > { %v479_v41 = vadd.f32 %v478_v36, %v468_v33  ;;  %v496_v42 = vadd.f32 %v495_v39, %v493_v38  ;;  %v503_v43 = vstv %s850_s18  ;;  %s856_s16 = sld [smem:[#allocation8 + $0x10]] }
  0x73   : > { %v489_v44 = vmul.f32 %v488_v37, %v486_v40  ;;  %v504_v46 = vmul.f32 %v503_v43, %v1312_v0  ;;  %v506_v47 = vstv %s851_s21  ;;  %s857_s17 = sld [smem:[#allocation9 + $0x10]] }
  0x74   : > { %v497_v48 = vmax.f32 %v496_v42, 0.0  ;;  %s1369_s12 = sld [smem:[#allocation10 + $0x10]]  ;;  %v510_v53 = vstv %s1361_s22 }
  0x75   : > { %v490_v49 = vadd.f32 %v489_v44, %v479_v41  ;;  %v507_v50 = vadd.f32 %v506_v47, %v504_v46  ;;  %v514_v51 = vstv %s853_s25  ;;  %s859_s24 = sld [smem:[#allocation8 + $0x11]] }
  0x76   : > { %v500_v52 = vmul.f32 %v499_v45, %v497_v48  ;;  %v515_v54 = vmul.f32 %v514_v51, %v1312_v0  ;;  %v517_v55 = vstv %s854_s15  ;;  %s860_s8 = sld [smem:[#allocation9 + $0x11]] }
  0x77   : > { %v508_v56 = vmax.f32 %v507_v50, 0.0  ;;  %s1373_s13 = sld [smem:[#allocation10 + $0x11]]  ;;  %v521_v61 = vstv %s1365_s14 }
  0x78   : > { %v501_v57 = vadd.f32 %v500_v52, %v490_v49  ;;  %v518_v58 = vadd.f32 %v517_v55, %v515_v54  ;;  %v525_v59 = vstv %s856_s16  ;;  %s862_s20 = sld [smem:[#allocation8 + $0x12]] }
  0x79   : > { %v511_v60 = vmul.f32 %v510_v53, %v508_v56  ;;  %v526_v62 = vmul.f32 %v525_v59, %v1312_v0  ;;  %v528_v63 = vstv %s857_s17  ;;  %s863_s18 = sld [smem:[#allocation9 + $0x12]] }
  0x7a   : > { %v519_v1 = vmax.f32 %v518_v58, 0.0  ;;  %s864_s21 = sld [smem:[#allocation10 + $0x12]]  ;;  %v532_v6 = vstv %s1369_s12  ;;  %s1388_s12 = scalar_lea.vmem [#allocation13], %s806_s19 }
  0x7b   : > { %v512_v2 = vadd.f32 %v511_v60, %v501_v57  ;;  %v529_v3 = vadd.f32 %v528_v63, %v526_v62  ;;  %v536_v4 = vstv %s859_s24  ;;  %s865_s22 = sld [smem:[#allocation8 + $0x13]]  ;;  %s1393_s24 = scalar_lea.vmem [#allocation12], %s1290_s11 }
  0x7c   : > { %v522_v5 = vmul.f32 %v521_v61, %v519_v1  ;;  %v537_v7 = vmul.f32 %v536_v4, %v1312_v0  ;;  %v539_v8 = vstv %s860_s8  ;;  %s866_s25 = sld [smem:[#allocation9 + $0x13]] }
  0x7d   : > { %v530_v9 = vmax.f32 %v529_v3, 0.0  ;;  %s867_s15 = sld [smem:[#allocation10 + $0x13]]  ;;  %v543_v14 = vstv %s1373_s13 }
  0x7e   : > { %v523_v10 = vadd.f32 %v522_v5, %v512_v2  ;;  %v540_v11 = vadd.f32 %v539_v8, %v537_v7  ;;  %v547_v12 = vstv %s862_s20  ;;  %s569_s17 = sld [smem:[#allocation2]] }
  0x7f   : > { %v533_v13 = vmul.f32 %v532_v6, %v530_v9  ;;  %v548_v15 = vmul.f32 %v547_v12, %v1312_v0  ;;  %v550_v16 = vstv %s863_s18 }
  0x80   : > { %v541_v17 = vmax.f32 %v540_v11, 0.0  ;;  %v554_v22 = vstv %s864_s21 }
  0x81   : > { %v534_v18 = vadd.f32 %v533_v13, %v523_v10  ;;  %v551_v19 = vadd.f32 %v550_v16, %v548_v15  ;;  %v558_v20 = vstv %s865_s22 }
  0x82   : > { %v544_v21 = vmul.f32 %v543_v14, %v541_v17  ;;  %v559_v23 = vmul.f32 %v558_v20, %v1312_v0  ;;  %v561_v24 = vstv %s866_s25 }
  0x83   : > { %v552_v25 = vmax.f32 %v551_v19, 0.0  ;;  %v565_v29 = vstv %s867_s15 }
  0x84   : > { %v545_v26 = vadd.f32 %v544_v21, %v534_v18  ;;  %v562_v27 = vadd.f32 %v561_v24, %v559_v23  ;;  %v570_v35 = vstv %s569_s17 }
  0x85   : > { %v555_v28 = vmul.f32 %v554_v22, %v552_v25 }
  0x86   : > { %v563_v30 = vmax.f32 %v562_v27, 0.0 }
  0x87   : > { %v556_v31 = vadd.f32 %v555_v28, %v545_v26 }
  0x88   : > { %v566_v32 = vmul.f32 %v565_v29, %v563_v30 }
  0x8a   : > { %v567_v33 = vadd.f32 %v566_v32, %v556_v31 }
  0x8c   : > { %868 = vmatpush.msk.msra.mxu0 %vm575_vm0, %v567_v33 }
  0x8d   : > { %869 = vmatmul.msk.f32.vlgmr.msra.gmra.mxu0 %vm571_vm1, %v568_v34 }
 0x109   : > { %604 = sbr.rel (%p1468_p1) target bundleno = 287 (0x11f), region = 64 }
 0x10a   : > { %v596_v36 = vpop.f32.mrf.mxu0 }
 0x10b   : > { %v597_v37 = vadd.f32 %v596_v36, %v570_v35 }
 0x10d   : > { %599 = vst [vmem:[%s1388_s12] sm:$0xf] %v597_v37  ;;  %v600_v38 = vsub.f32 %v597_v37, %v1312_v0 }
 0x10f   : > { %v605_v39 = vmul.f32 %v600_v38, %v600_v38 }
 0x111   : > { %v606_v40 = vsel %vm575_vm0, %v605_v39, 0.0 }
 0x112   : > { %v607_v41 = vrot.slane %v606_v40, 4 }
 0x114   : > { %v608_v42 = vadd.f32 %v607_v41, %v606_v40 }
 0x116   : > { %v609_v43 = vrot.slane %v608_v42, 2 }
 0x118   : > { %v610_v44 = vadd.f32 %v609_v43, %v608_v42 }
 0x11a   : > { %v611_v45 = vrot.slane %v610_v44, 1 }
 0x11c   : > { %v612_v46 = vadd.f32 %v611_v45, %v610_v44 }
 0x11e   : > { %613 = vst [vmem:[%s1393_s24] sm:$0x1] %v612_v46 }
 0x11f PF: > { %p871_p2 = scmp.ne.s32.totalorder %s1212_s4, 1 }
 0x121   : > { %617 = sbr.rel (%p871_p2) target bundleno = 318 (0x13e), region = 68 }
 0x126   : > { %v618_v0 = vlaneseq }
 0x128   : > { %v619_v47 = vand.u32 127, %v618_v0 }
 0x12a   : > { %v620_v48 = vadd.s32 128, %v619_v47 }
 0x12c   : > { %vm621_vm2 = vcmp.lt.s32.totalorder %v620_v48, 200 }
 0x12d   : > { %v622_v49 = vsel %vm621_vm2, %v600_v38, 0.0 }
 0x12e   : > { %v623_v50 = vmul.f32 %v622_v49, %v622_v49 }
 0x130   : > { %v624_v51 = vsel %vm575_vm0, %v623_v50, 0.0 }
 0x131   : > { %v625_v52 = vrot.slane %v624_v51, 4 }
 0x133   : > { %v626_v53 = vadd.f32 %v625_v52, %v624_v51 }
 0x135   : > { %v627_v54 = vrot.slane %v626_v53, 2 }
 0x137   : > { %v628_v55 = vadd.f32 %v627_v54, %v626_v53 }
 0x139   : > { %v629_v56 = vrot.slane %v628_v55, 1 }
 0x13b   : > { %v630_v57 = vadd.f32 %v629_v56, %v628_v55 }
 0x13d   : > { %631 = vst [vmem:[%s1393_s24] sm:$0x1] %v630_v57 }
 0x13e PF: > { %s646_s13 = scalar_lea.hbm %s1458_s6, %s1212_s4  ;;  %s648_s20 = sshll.u32 %s1393_s24, 4  ;;  %s649_s20 = int_to_ptr.vmem [resolvable:$true] %s648_s20 }
 0x13f   : > { %s650_s18 = sshll.u32 %s646_s13, 4  ;;  %s633_s21 = scalar_lea.sflag [#allocation5], %s1290_s11  ;;  %s651_s18 = int_to_ptr.hbm [resolvable:$true] %s650_s18 }
 0x140   : > { %s1047_s22 = sshra.s32 %s651_s18, 4  ;;  %s1053_s16 = scalar_lea.hbm %s1458_s6, 2  ;;  %s1048_s22 = int_to_ptr.hbm [resolvable:$true] %s1047_s22 }
 0x141   : > { %s1049_s25 = scalar_lea.hbm %s1048_s22, 1  ;;  %p1054_p10 = scmp.lt.s32.totalorder %s1048_s22, %s1458_s6 }
 0x142   : > { %p1050_p4 = scmp.ne.s32.totalorder %s1048_s22, %s1049_s25  ;;  %p1055_p11 = scmp.lt.s32.totalorder %s1053_s16, %s1049_s25 }
 0x144   : > { %p1051_p8 = pnand %p1050_p4, %p1263_p3  ;;  %p1056_p12 = por %p1055_p11, %p1054_p10 }
 0x146   : > { %p1052_p9 = pneg %p1051_p8 }
 0x148   : > { %p1057_p13 = pnand %p1056_p12, %p1052_p9 }
 0x14a   : > { %1060 = shalt.err (!%p1057_p13)
}
 0x14b   : > { %890 = dma.vmem_to_hbm [thread:$0]  (%p1263_p3), %s649_s20, 16, %s651_s18, %s633_s21  }
 0x14c   : > { %s873_s24 = sshll.u32 %s1212_s4, 2  ;;  %s662_s14 = sshll.u32 %s1388_s12, 4  ;;  %s663_s14 = int_to_ptr.vmem [resolvable:$true] %s662_s14 }
 0x14d   : > { %s660_s15 = scalar_lea.hbm %s1459_s7, %s873_s24  ;;  %s637_s22 = scalar_lea.sflag [#allocation14], %s1290_s11 }
 0x14e   : > { %s664_s17 = sshll.u32 %s660_s15, 4  ;;  %s1081_s4 = scalar_lea.hbm %s1459_s7, 8  ;;  %s665_s17 = int_to_ptr.hbm [resolvable:$true] %s664_s17 }
 0x14f   : > { %s1075_s25 = sshra.s32 %s665_s17, 4  ;;  %s1076_s25 = int_to_ptr.hbm [resolvable:$true] %s1075_s25 }
 0x150   : > { %s1077_s16 = scalar_lea.hbm %s1076_s25, 4  ;;  %p1082_p1 = scmp.lt.s32.totalorder %s1076_s25, %s1459_s7 }
 0x151   : > { %p1078_p0 = scmp.ne.s32.totalorder %s1076_s25, %s1077_s16  ;;  %p1083_p2 = scmp.lt.s32.totalorder %s1081_s4, %s1077_s16 }
 0x153   : > { %p1079_p5 = pnand %p1078_p0, %p1263_p3  ;;  %p1084_p4 = por %p1083_p2, %p1082_p1 }
 0x155   : > { %p1080_p7 = pneg %p1079_p5 }
 0x157   : > { %p1085_p8 = pnand %p1084_p4, %p1080_p7 }
 0x159   : > { %1088 = shalt.err (!%p1085_p8)
}
 0x15a   : > { %891 = dma.vmem_to_hbm [thread:$0]  (%p1263_p3), %s663_s14, 64, %s665_s17, %s637_s22  }
 0x15b PF: > { %s676_s11 = sand.u32 1, %s1131_s26   ;;  %p1469_p9 = scmp.ge.s32.totalorder %s1143_s29, 2 }
 0x15c   : > { %s677_s0 = scalar_lea.sflag [#allocation5], %s676_s11 }
 0x15d   : > { %p909_p10 = pnand %p1469_p9, %p1226_p6 }
 0x15f   : > { %p910_p11 = pneg %p909_p10 }
 0x161   : > { %1122 = dma.done.wait (%p910_p11), %s677_s0, 16  }
 0x162   : > { %1124 = vsyncadd (%p910_p11), %s677_s0, 4294967280  ;;  %s686_s12 = scalar_lea.sflag [#allocation14], %s676_s11 }
 0x163   : > { %1126 = dma.done.wait (%p910_p11), %s686_s12, 64  }
 0x164   : > { %1128 = vsyncadd (%p910_p11), %s686_s12, 4294967232  ;;  %p28_p3 = scmp.ge.s32.totalorder %s1250_s23, 4   ;;  %s1470_s26 = smov %s1135_s27 }
 0x165   : > { %s1471_s27 = smov %s1139_s28  ;;  %s1472_s28 = smov %s1259_s30 }
 0x166   : > { %s1473_s29 = smov %s1250_s23  ;;  %30 = sbr.rel (!%p28_p3) target bundleno = 13 (0xd), region = 128 }
 0x16b   :  { %692 = vsyncpa [#allocation4], 1 }
 0x16c   :  { %694 = vsyncpa [#allocation4 + $0x1], 1 }
 0x16d   :  { %695 = vsyncpa [#allocation5], 1 }
 0x16e   :  { %697 = vsyncpa [#allocation5 + $0x1], 1 }
 0x16f   :  { %698 = vsyncpa [#allocation14], 1 }
 0x170   :  { %700 = vsyncpa [#allocation14 + $0x1], 1 }
 0x171   :  { %701 = vsyncpa [#allocation6], 1 }
 0x172   :  { %703 = vsyncpa [#allocation6 + $0x1], 1 }
 0x173   :  { %704 = vsyncpa [#allocation11], 1 }
 0x174   :  { %705 = vsyncpa [#allocation7], 1 }
 0x175   :  { %707 = vsyncpa [#allocation7 + $0x1], 1 }

</bundles_post_ra>
